<compile_context>
chip_gen: v7x
topology: tpu7x:2x2x1
jax: 0.10.0
libtpu: 0.0.40
codegen_flags: <defaults>
</compile_context>

<pallas_src>
import math

import jax
import jax.numpy as jnp
from jax import lax
from jax.experimental import pallas as pl
from jax.experimental.pallas import tpu as pltpu

EPS_DIST = 1e-10
BN_EPS = 1e-5
BIG = 1e30
LANE = 128
# Interp tile kept modest: the kernel holds several (TN, S) f32 temporaries
# plus the resident (S, d2p) points2 block, and v7x has only 64 MiB VMEM.
INTERP_ROW_TILE = 256
# Large row tiles for the (memory-bound) MLP passes: amortize the ~0.35 us
# per-grid-step overhead; at typical PointNet widths this is still only a few
# MiB of VMEM per buffer.
MLP_ROW_TILE = 2048


def _round_up(x, m):
    return ((x + m - 1) // m) * m


def _vmem_limit_bytes():
    # Use most of VMEM on 128 MiB parts (v5e/v6e); stay conservative on v7x.
    try:
        cap = int(pltpu.get_tpu_info().vmem_capacity_bytes)
    except Exception:
        cap = 64 * 1024 * 1024
    return min(96 * 1024 * 1024, (cap * 3) // 4)


VMEM_LIMIT = _vmem_limit_bytes()


def _pick_tile(n, max_tile, min_tile=128):
    """Pick a row tile (multiple of 8).  Prefer one that divides n exactly so
    no pad / slice+re-pad copies of the activation are needed."""
    n8 = _round_up(n, 8)
    cap = min(max_tile, n8)
    if n == n8 and n % cap != 0:
        t = cap - (cap % 8)
        while t >= max(min_tile, 8):
            if n % t == 0:
                return t
            t -= 8
    return cap


# --------------------------------------------------------------------------
# Kernel 1: 3-NN inverse-distance interpolation, tiled over (batch, N-tile).
# --------------------------------------------------------------------------
def _interp_kernel(a_ref, b_ref, p_ref, o_ref):
    a = a_ref[0]           # (TN, 8)  columns: [-2*x1, 1, |x1|^2, 0, 0, 0]
    bm = b_ref[0]          # (S, 8)   columns: [ x2, |x2|^2, 1, 0, 0, 0]
    p2 = p_ref[0]          # (S, D2p)
    TN = a.shape[0]
    S = bm.shape[0]

    # Squared distances via one K=8 MXU matmul (norm terms folded in).
    d = lax.dot_general(a, bm, dimension_numbers=(((1,), (1,)), ((), ())),
                        preferred_element_type=jnp.float32)        # (TN, S)

    # (1, S) iota; rely on broadcasting (no (TN, S) int32 buffer).
    col = lax.broadcasted_iota(jnp.int32, (1, S), 1)
    w_acc = jnp.zeros((TN, S), jnp.float32)
    w_sum = jnp.zeros((TN, 1), jnp.float32)
    dcur = d
    # Top-3 smallest distances: iterative min + first-index tie-break
    # (matches the first 3 columns of a stable sort).
    for _ in range(3):
        dmin = jnp.min(dcur, axis=-1, keepdims=True)                 # (TN, 1)
        idx = jnp.min(jnp.where(dcur == dmin, col, S),
                      axis=-1, keepdims=True)                        # (TN, 1)
        onehot = (col == idx).astype(jnp.float32)                    # (TN, S)
        # clamp (matches torch: dists[dists<1e-10]=1e-10) then exact 1/d on a
        # tiny (TN,1) tensor -- negligible cost, no approx-reciprocal error.
        wk = 1.0 / jnp.maximum(dmin, EPS_DIST)
        w_acc = w_acc + wk * onehot
        w_sum = w_sum + wk
        dcur = jnp.where(onehot > 0.0, BIG, dcur)                    # mask chosen

    # Gather as matmul; normalize AFTER the matmul (cheaper than (N,S) divide).
    interp = jnp.dot(w_acc, p2, preferred_element_type=jnp.float32)  # (TN,D2p)
    o_ref[0] = (interp * (1.0 / w_sum)).astype(o_ref.dtype)          # bf16 out


def _interpolate(xyz1_t, xyz2_t, pts2_t, d2p):
    B, N, _ = xyz1_t.shape
    _, S, D2 = pts2_t.shape
    tn = _pick_tile(N, INTERP_ROW_TILE, min_tile=64)
    n_pad = _round_up(N, tn)

    # Augmented coordinates so d = a_aug @ b_aug^T gives the squared distance.
    sq1 = jnp.sum(xyz1_t * xyz1_t, axis=-1, keepdims=True)
    a_aug = jnp.concatenate(
        [-2.0 * xyz1_t, jnp.ones_like(sq1), sq1,
         jnp.zeros((B, N, 3), jnp.float32)], axis=-1)               # (B, N, 8)
    sq2 = jnp.sum(xyz2_t * xyz2_t, axis=-1, keepdims=True)
    b_aug = jnp.concatenate(
        [xyz2_t, sq2, jnp.ones_like(sq2),
         jnp.zeros((B, S, 3), jnp.float32)], axis=-1)               # (B, S, 8)

    if n_pad > N:
        a_aug = jnp.pad(a_aug, ((0, 0), (0, n_pad - N), (0, 0)))
    if d2p > D2:
        pts2_t = jnp.pad(pts2_t, ((0, 0), (0, 0), (0, d2p - D2)))

    nt = n_pad // tn
    out = pl.pallas_call(
        _interp_kernel,
        out_shape=jax.ShapeDtypeStruct((B, n_pad, d2p), jnp.bfloat16),
        grid=(B, nt),
        in_specs=[
            pl.BlockSpec((1, tn, 8), lambda b, n: (b, n, 0)),
            pl.BlockSpec((1, S, 8), lambda b, n: (b, 0, 0)),     # resident in n
            pl.BlockSpec((1, S, d2p), lambda b, n: (b, 0, 0)),   # resident in n
        ],
        out_specs=pl.BlockSpec((1, tn, d2p), lambda b, n: (b, n, 0)),
        compiler_params=pltpu.CompilerParams(
            dimension_semantics=("parallel", "parallel"),
            vmem_limit_bytes=VMEM_LIMIT),
    )(a_aug, b_aug, pts2_t)
    if n_pad > N:
        out = out[:, :N, :]
    return out


# --------------------------------------------------------------------------
# MLP layer pass 1: [fused prev-layer BN affine + ReLU] -> bf16 conv1x1
# matmul (f32 accum) -> per-tile BN partial sums.
# --------------------------------------------------------------------------
def _make_pass1_kernel(num_inputs, has_prologue, rows_valid, row_tile, nr,
                       need_mask):
    def kernel(*refs):
        pos = 0
        x_refs = refs[pos:pos + num_inputs]
        pos += num_inputs
        if has_prologue:
            pscale_ref = refs[pos]
            pshift_ref = refs[pos + 1]
            pos += 2
        w_refs = refs[pos:pos + num_inputs]
        pos += num_inputs
        y_ref, sum_ref, ssq_ref = refs[pos], refs[pos + 1], refs[pos + 2]

        acc = None
        for i in range(num_inputs):
            x = x_refs[i][...]
            if has_prologue:
                # Previous layer's folded-BN affine + ReLU, fused in-register
                # (saves a full HBM write+read of the activation per layer).
                x = jnp.maximum(
                    x.astype(jnp.float32) * pscale_ref[...] + pshift_ref[...],
                    0.0)
            part = jnp.dot(x.astype(jnp.bfloat16), w_refs[i][...],
                           preferred_element_type=jnp.float32)
            acc = part if acc is None else acc + part
        # Conv bias omitted on purpose: it is exactly cancelled by the
        # subsequent BatchNorm mean subtraction (ulp-level deviation only).
        y_ref[...] = acc.astype(y_ref.dtype)

        def write_stats(ym):
            sum_ref[...] = jnp.sum(ym, axis=0, keepdims=True)[None]      # (1,1,Cp)
            ssq_ref[...] = jnp.sum(ym * acc, axis=0, keepdims=True)[None]

        if need_mask:
            # Only the LAST tile contains padded rows; everyone else writes
            # unmasked sums (saves a (row_tile, Cp) VPU multiply per tile).
            @pl.when(pl.program_id(0) == nr - 1)
            def _():
                row = (pl.program_id(0) * row_tile
                       + lax.broadcasted_iota(jnp.int32, (row_tile, 1), 0))
                write_stats(acc * (row < rows_valid).astype(jnp.float32))

            @pl.when(pl.program_id(0) != nr - 1)
            def _():
                write_stats(acc)
        else:
            write_stats(acc)

    return kernel


def _mlp_pass1(x_list, w_list, pscale, pshift, rows_valid, row_tile, y_dtype):
    r_pad = x_list[0].shape[0]
    cp = w_list[0].shape[1]
    nr = r_pad // row_tile
    has_prologue = pscale is not None
    need_mask = r_pad > rows_valid

    kernel = _make_pass1_kernel(len(x_list), has_prologue, rows_valid,
                                row_tile, nr, need_mask)

    in_specs = [pl.BlockSpec((row_tile, x.shape[1]), lambda i: (i, 0))
                for x in x_list]
    args = list(x_list)
    if has_prologue:
        cin_p = x_list[0].shape[1]
        in_specs += [pl.BlockSpec((1, cin_p), lambda i: (0, 0)),
                     pl.BlockSpec((1, cin_p), lambda i: (0, 0))]
        args += [pscale, pshift]
    in_specs += [pl.BlockSpec((w.shape[0], cp), lambda i: (0, 0))
                 for w in w_list]
    args += list(w_list)

    return pl.pallas_call(
        kernel,
        out_shape=(jax.ShapeDtypeStruct((r_pad, cp), y_dtype),
                   jax.ShapeDtypeStruct((nr, 1, cp), jnp.float32),
                   jax.ShapeDtypeStruct((nr, 1, cp), jnp.float32)),
        grid=(nr,),
        in_specs=in_specs,
        out_specs=[pl.BlockSpec((row_tile, cp), lambda i: (i, 0)),
                   pl.BlockSpec((1, 1, cp), lambda i: (i, 0, 0)),
                   pl.BlockSpec((1, 1, cp), lambda i: (i, 0, 0))],
        compiler_params=pltpu.CompilerParams(
            dimension_semantics=("parallel",),
            vmem_limit_bytes=VMEM_LIMIT),
    )(*args)


# --------------------------------------------------------------------------
# Final-layer folded-BN affine + ReLU (f32, lane-dense tiles).
# --------------------------------------------------------------------------
def _affine_relu_kernel(y_ref, scale_ref, shift_ref, z_ref):
    z = y_ref[...] * scale_ref[...] + shift_ref[...]
    z_ref[...] = jnp.maximum(z, 0.0).astype(z_ref.dtype)


def _mlp_affine_relu(y, scale, shift, row_tile):
    r_pad, cp = y.shape
    nr = r_pad // row_tile
    return pl.pallas_call(
        _affine_relu_kernel,
        out_shape=jax.ShapeDtypeStruct((r_pad, cp), jnp.float32),
        grid=(nr,),
        in_specs=[pl.BlockSpec((row_tile, cp), lambda i: (i, 0)),
                  pl.BlockSpec((1, cp), lambda i: (0, 0)),
                  pl.BlockSpec((1, cp), lambda i: (0, 0))],
        out_specs=pl.BlockSpec((row_tile, cp), lambda i: (i, 0)),
        compiler_params=pltpu.CompilerParams(
            dimension_semantics=("parallel",),
            vmem_limit_bytes=VMEM_LIMIT),
    )(y, scale, shift)


# --------------------------------------------------------------------------
# Full forward (wrapper: permutes, padding, weight prep, per-layer loop)
# --------------------------------------------------------------------------
def pointnet_fp_forward(xyz1, xyz2, points1, points2, params):
    """xyz1: [B,3,N], xyz2: [B,3,S], points1: [B,D1,N] or None, points2: [B,D2,S].
    Returns [B, mlp[-1], N] (PyTorch layout)."""
    xyz1_t = jnp.transpose(xyz1, (0, 2, 1)).astype(jnp.float32)     # [B, N, 3]
    xyz2_t = jnp.transpose(xyz2, (0, 2, 1)).astype(jnp.float32)     # [B, S, 3]
    pts2_t = jnp.transpose(points2, (0, 2, 1)).astype(jnp.float32)  # [B, S, D2]
    B, N, _ = xyz1_t.shape
    _, S, D2 = pts2_t.shape
    d2p = _round_up(D2, LANE)

    if S == 1:
        # trivial repeat branch stays in plain JAX (no hot compute)
        interp = jnp.broadcast_to(pts2_t, (B, N, D2)).astype(jnp.bfloat16)
        interp = jnp.pad(interp, ((0, 0), (0, 0), (0, d2p - D2)))
    else:
        interp = _interpolate(xyz1_t, xyz2_t, pts2_t, d2p)   # [B,N,d2p] bf16

    R = B * N
    row_tile = _pick_tile(R, MLP_ROW_TILE, min_tile=256)
    r_pad = _round_up(R, row_tile)

    # First-layer inputs kept separate (no concat HBM round-trip), bf16 in HBM
    # (pass-1 casts to bf16 anyway -> bit-identical matmul inputs).
    x_list, valid_dims = [], []
    if points1 is not None:
        D1 = points1.shape[1]
        p1 = jnp.transpose(points1, (0, 2, 1)).astype(jnp.bfloat16).reshape(R, D1)
        x_list.append(p1)
        valid_dims.append(D1)
    x_list.append(interp.reshape(R, d2p))
    valid_dims.append(D2)
    if r_pad > R:
        x_list = [jnp.pad(x, ((0, r_pad - R), (0, 0))) for x in x_list]

    L = len(params)
    prev_scale = prev_shift = None
    y = None
    cout_valid = None
    for li, (w, _b, gamma, beta) in enumerate(params):
        cout = w.shape[0]
        cout_p = _round_up(cout, LANE)
        # Split / transpose / pad / bf16-cast the conv1x1 weight per input.
        w_list, off = [], 0
        for x, valid in zip(x_list, valid_dims):
            wt = w[:, off:off + valid].T                              # (valid, cout)
            wt = jnp.pad(wt, ((0, x.shape[1] - valid), (0, cout_p - cout)))
            w_list.append(wt.astype(jnp.bfloat16))
            off += valid
        gamma_p = jnp.pad(gamma, (0, cout_p - cout))
        beta_p = jnp.pad(beta, (0, cout_p - cout))

        # Intermediate pre-BN activations live in bf16; final layer stays f32.
        y_dtype = jnp.float32 if li == L - 1 else jnp.bfloat16
        y, s_part, ss_part = _mlp_pass1(x_list, w_list, prev_scale, prev_shift,
                                        R, row_tile, y_dtype)
        s_tot = jnp.sum(s_part, axis=(0, 1))                          # (cout_p,)
        ss_tot = jnp.sum(ss_part, axis=(0, 1))
        mean = s_tot / R
        var = jnp.maximum(ss_tot / R - mean * mean, 0.0)              # biased
        inv_std = lax.rsqrt(var + BN_EPS)
        prev_scale = (gamma_p * inv_std).reshape(1, cout_p)
        prev_shift = (beta_p - mean * gamma_p * inv_std).reshape(1, cout_p)

        x_list, valid_dims = [y], [cout]
        cout_valid = cout

    # Only the last layer's affine+ReLU runs standalone; all others are fused
    # into the next layer's pass-1.
    z = _mlp_affine_relu(y, prev_scale, prev_shift, row_tile)         # (r_pad, cp)
    out = z[:R, :cout_valid].reshape(B, N, cout_valid)
    return jnp.transpose(out, (0, 2, 1))


def init_params(key, in_channel, mlp):
    """Deterministic init mimicking PyTorch Conv1d defaults; BN gamma=1, beta=0."""
    params = []
    last = in_channel
    for out in mlp:
        key, k1, k2 = jax.random.split(key, 3)
        bound = 1.0 / math.sqrt(last)
        w = jax.random.uniform(k1, (out, last), jnp.float32, -bound, bound)
        b = jax.random.uniform(k2, (out,), jnp.float32, -bound, bound)
        gamma = jnp.ones((out,), jnp.float32)
        beta = jnp.zeros((out,), jnp.float32)
        params.append((w, b, gamma, beta))
        last = out
    return params


if __name__ == "__main__":
    key = jax.random.PRNGKey(0)
    B, N, S, D1, D2 = 2, 16, 8, 4, 8
    mlp = [16, 32]
    in_channel = D1 + D2

    k1, k2, k3, k4, kp = jax.random.split(key, 5)
    xyz1 = jax.random.normal(k1, (B, 3, N), jnp.float32)
    xyz2 = jax.random.normal(k2, (B, 3, S), jnp.float32)
    points1 = jax.random.normal(k3, (B, D1, N), jnp.float32)
    points2 = jax.random.normal(k4, (B, D2, S), jnp.float32)

    params = init_params(kp, in_channel, mlp)

    out = pointnet_fp_forward(xyz1, xyz2, points1, points2, params)
    out = jax.block_until_ready(out)
    assert out.shape == (B, mlp[-1], N), out.shape
    assert bool(jnp.all(jnp.isfinite(out)))
    print("KERNEL_OK")
</pallas_src>

<mosaic_0001>
module attributes {stable_mosaic.version = 11 : i64} {
  func.func @_interp_kernel(%arg0: i32, %arg1: i32, %arg2: memref<1x16x8xf32, #tpu.memory_space<vmem>>, %arg3: memref<1x8x8xf32, #tpu.memory_space<vmem>>, %arg4: memref<1x8x128xf32, #tpu.memory_space<vmem>>, %arg5: memref<1x16x128xbf16, #tpu.memory_space<vmem>>) attributes {dimension_semantics = [#tpu.dimension_semantics<parallel>, #tpu.dimension_semantics<parallel>], iteration_bounds = array<i64: 2, 1>, scalar_prefetch = 0 : i64, scratch_operands = 0 : i64, tpu.core_type = #tpu.core_type<tc>, window_params = [{transform_indices = @transform_0, window_bounds = array<i64: 1, 16, 8>}, {transform_indices = @transform_1, window_bounds = array<i64: 1, 8, 8>}, {transform_indices = @transform_2, window_bounds = array<i64: 1, 8, 128>}, {transform_indices = @transform_3, window_bounds = array<i64: 1, 16, 128>}]} {
    %c0 = arith.constant 0 : index
    %c0_0 = arith.constant 0 : index
    %c0_1 = arith.constant 0 : index
    %0 = vector.load %arg2[%c0, %c0_0, %c0_1] : memref<1x16x8xf32, #tpu.memory_space<vmem>>, vector<1x16x8xf32>
    %1 = vector.shape_cast %0 : vector<1x16x8xf32> to vector<16x8xf32>
    %c0_2 = arith.constant 0 : index
    %c0_3 = arith.constant 0 : index
    %c0_4 = arith.constant 0 : index
    %2 = vector.load %arg3[%c0_2, %c0_3, %c0_4] : memref<1x8x8xf32, #tpu.memory_space<vmem>>, vector<1x8x8xf32>
    %3 = vector.shape_cast %2 : vector<1x8x8xf32> to vector<8x8xf32>
    %c0_5 = arith.constant 0 : index
    %c0_6 = arith.constant 0 : index
    %c0_7 = arith.constant 0 : index
    %4 = vector.load %arg4[%c0_5, %c0_6, %c0_7] : memref<1x8x128xf32, #tpu.memory_space<vmem>>, vector<1x8x128xf32>
    %5 = vector.shape_cast %4 : vector<1x8x128xf32> to vector<8x128xf32>
    %cst = arith.constant dense<0.000000e+00> : vector<16x8xf32>
    %6 = tpu.matmul %1, %3, %cst {dimension_numbers = #tpu.dot_dimension_numbers<[1], [1], [0], [0], [0, 0, 1, 0], [], []>} : vector<16x8xf32>, vector<8x8xf32>, vector<16x8xf32> -> vector<16x8xf32>
    %7 = tpu.iota {dimensions = array<i32: 1>} : vector<1x8xi32>
    %cst_8 = arith.constant 0.000000e+00 : f32
    %8 = vector.broadcast %cst_8 : f32 to vector<16x8xf32>
    %cst_9 = arith.constant 0.000000e+00 : f32
    %9 = vector.broadcast %cst_9 : f32 to vector<16x1xf32>
    %cst_10 = arith.constant dense<0x7F800000> : vector<16xf32>
    %10 = vector.multi_reduction <minimumf>, %6, %cst_10 [1] : vector<16x8xf32> to vector<16xf32>
    %11 = vector.shape_cast %10 : vector<16xf32> to vector<16x1xf32>
    %12 = vector.broadcast %11 : vector<16x1xf32> to vector<16x8xf32>
    %13 = arith.cmpf oeq, %6, %12 : vector<16x8xf32>
    %c8_i32 = arith.constant 8 : i32
    %14 = vector.shape_cast %7 : vector<1x8xi32> to vector<1x8xi32>
    %15 = vector.broadcast %14 : vector<1x8xi32> to vector<16x8xi32>
    %16 = vector.broadcast %c8_i32 : i32 to vector<16x8xi32>
    %17 = arith.select %13, %15, %16 : vector<16x8xi1>, vector<16x8xi32>
    %cst_11 = arith.constant dense<2147483647> : vector<16xi32>
    %18 = vector.multi_reduction <minsi>, %17, %cst_11 [1] : vector<16x8xi32> to vector<16xi32>
    %19 = vector.shape_cast %18 : vector<16xi32> to vector<16x1xi32>
    %20 = vector.broadcast %7 : vector<1x8xi32> to vector<16x8xi32>
    %21 = vector.broadcast %19 : vector<16x1xi32> to vector<16x8xi32>
    %22 = arith.cmpi eq, %20, %21 : vector<16x8xi32>
    %23 = arith.extui %22 : vector<16x8xi1> to vector<16x8xi32>
    %24 = arith.sitofp %23 : vector<16x8xi32> to vector<16x8xf32>
    %cst_12 = arith.constant 1.000000e-10 : f32
    %25 = vector.broadcast %cst_12 : f32 to vector<16x1xf32>
    %26 = arith.maximumf %11, %25 : vector<16x1xf32>
    %cst_13 = arith.constant 1.000000e+00 : f32
    %27 = vector.broadcast %cst_13 : f32 to vector<16x1xf32>
    %28 = arith.divf %27, %26 : vector<16x1xf32>
    %29 = vector.broadcast %28 : vector<16x1xf32> to vector<16x8xf32>
    %30 = arith.mulf %29, %24 : vector<16x8xf32>
    %31 = arith.addf %8, %30 : vector<16x8xf32>
    %32 = arith.addf %9, %28 : vector<16x1xf32>
    %cst_14 = arith.constant 0.000000e+00 : f32
    %33 = vector.broadcast %cst_14 : f32 to vector<16x8xf32>
    %34 = arith.cmpf ogt, %24, %33 : vector<16x8xf32>
    %cst_15 = arith.constant 1.000000e+30 : f32
    %35 = vector.broadcast %cst_15 : f32 to vector<16x8xf32>
    %36 = arith.select %34, %35, %6 : vector<16x8xi1>, vector<16x8xf32>
    %cst_16 = arith.constant dense<0x7F800000> : vector<16xf32>
    %37 = vector.multi_reduction <minimumf>, %36, %cst_16 [1] : vector<16x8xf32> to vector<16xf32>
    %38 = vector.shape_cast %37 : vector<16xf32> to vector<16x1xf32>
    %39 = vector.broadcast %38 : vector<16x1xf32> to vector<16x8xf32>
    %40 = arith.cmpf oeq, %36, %39 : vector<16x8xf32>
    %c8_i32_17 = arith.constant 8 : i32
    %41 = vector.shape_cast %7 : vector<1x8xi32> to vector<1x8xi32>
    %42 = vector.broadcast %41 : vector<1x8xi32> to vector<16x8xi32>
    %43 = vector.broadcast %c8_i32_17 : i32 to vector<16x8xi32>
    %44 = arith.select %40, %42, %43 : vector<16x8xi1>, vector<16x8xi32>
    %cst_18 = arith.constant dense<2147483647> : vector<16xi32>
    %45 = vector.multi_reduction <minsi>, %44, %cst_18 [1] : vector<16x8xi32> to vector<16xi32>
    %46 = vector.shape_cast %45 : vector<16xi32> to vector<16x1xi32>
    %47 = vector.broadcast %7 : vector<1x8xi32> to vector<16x8xi32>
    %48 = vector.broadcast %46 : vector<16x1xi32> to vector<16x8xi32>
    %49 = arith.cmpi eq, %47, %48 : vector<16x8xi32>
    %50 = arith.extui %49 : vector<16x8xi1> to vector<16x8xi32>
    %51 = arith.sitofp %50 : vector<16x8xi32> to vector<16x8xf32>
    %cst_19 = arith.constant 1.000000e-10 : f32
    %52 = vector.broadcast %cst_19 : f32 to vector<16x1xf32>
    %53 = arith.maximumf %38, %52 : vector<16x1xf32>
    %cst_20 = arith.constant 1.000000e+00 : f32
    %54 = vector.broadcast %cst_20 : f32 to vector<16x1xf32>
    %55 = arith.divf %54, %53 : vector<16x1xf32>
    %56 = vector.broadcast %55 : vector<16x1xf32> to vector<16x8xf32>
    %57 = arith.mulf %56, %51 : vector<16x8xf32>
    %58 = arith.addf %31, %57 : vector<16x8xf32>
    %59 = arith.addf %32, %55 : vector<16x1xf32>
    %cst_21 = arith.constant 0.000000e+00 : f32
    %60 = vector.broadcast %cst_21 : f32 to vector<16x8xf32>
    %61 = arith.cmpf ogt, %51, %60 : vector<16x8xf32>
    %cst_22 = arith.constant 1.000000e+30 : f32
    %62 = vector.broadcast %cst_22 : f32 to vector<16x8xf32>
    %63 = arith.select %61, %62, %36 : vector<16x8xi1>, vector<16x8xf32>
    %cst_23 = arith.constant dense<0x7F800000> : vector<16xf32>
    %64 = vector.multi_reduction <minimumf>, %63, %cst_23 [1] : vector<16x8xf32> to vector<16xf32>
    %65 = vector.shape_cast %64 : vector<16xf32> to vector<16x1xf32>
    %66 = vector.broadcast %65 : vector<16x1xf32> to vector<16x8xf32>
    %67 = arith.cmpf oeq, %63, %66 : vector<16x8xf32>
    %c8_i32_24 = arith.constant 8 : i32
    %68 = vector.shape_cast %7 : vector<1x8xi32> to vector<1x8xi32>
    %69 = vector.broadcast %68 : vector<1x8xi32> to vector<16x8xi32>
    %70 = vector.broadcast %c8_i32_24 : i32 to vector<16x8xi32>
    %71 = arith.select %67, %69, %70 : vector<16x8xi1>, vector<16x8xi32>
    %cst_25 = arith.constant dense<2147483647> : vector<16xi32>
    %72 = vector.multi_reduction <minsi>, %71, %cst_25 [1] : vector<16x8xi32> to vector<16xi32>
    %73 = vector.shape_cast %72 : vector<16xi32> to vector<16x1xi32>
    %74 = vector.broadcast %7 : vector<1x8xi32> to vector<16x8xi32>
    %75 = vector.broadcast %73 : vector<16x1xi32> to vector<16x8xi32>
    %76 = arith.cmpi eq, %74, %75 : vector<16x8xi32>
    %77 = arith.extui %76 : vector<16x8xi1> to vector<16x8xi32>
    %78 = arith.sitofp %77 : vector<16x8xi32> to vector<16x8xf32>
    %cst_26 = arith.constant 1.000000e-10 : f32
    %79 = vector.broadcast %cst_26 : f32 to vector<16x1xf32>
    %80 = arith.maximumf %65, %79 : vector<16x1xf32>
    %cst_27 = arith.constant 1.000000e+00 : f32
    %81 = vector.broadcast %cst_27 : f32 to vector<16x1xf32>
    %82 = arith.divf %81, %80 : vector<16x1xf32>
    %83 = vector.broadcast %82 : vector<16x1xf32> to vector<16x8xf32>
    %84 = arith.mulf %83, %78 : vector<16x8xf32>
    %85 = arith.addf %58, %84 : vector<16x8xf32>
    %86 = arith.addf %59, %82 : vector<16x1xf32>
    %cst_28 = arith.constant dense<0.000000e+00> : vector<16x128xf32>
    %87 = tpu.matmul %85, %5, %cst_28 {dimension_numbers = #tpu.dot_dimension_numbers<[1], [0], [0], [1], [0, 0, 1, 1], [], []>} : vector<16x8xf32>, vector<8x128xf32>, vector<16x128xf32> -> vector<16x128xf32>
    %cst_29 = arith.constant 1.000000e+00 : f32
    %88 = vector.broadcast %cst_29 : f32 to vector<16x1xf32>
    %89 = arith.divf %88, %86 : vector<16x1xf32>
    %90 = vector.broadcast %89 : vector<16x1xf32> to vector<16x128xf32>
    %91 = arith.mulf %87, %90 : vector<16x128xf32>
    %92 = arith.truncf %91 : vector<16x128xf32> to vector<16x128xbf16>
    %c0_30 = arith.constant 0 : index
    %c0_31 = arith.constant 0 : index
    %c0_32 = arith.constant 0 : index
    %93 = vector.load %arg5[%c0_30, %c0_31, %c0_32] : memref<1x16x128xbf16, #tpu.memory_space<vmem>>, vector<1x16x128xbf16>
    %94 = vector.shape_cast %93 : vector<1x16x128xbf16> to vector<16x128xbf16>
    %95 = vector.shape_cast %92 : vector<16x128xbf16> to vector<1x16x128xbf16>
    tpu.vector_store %arg5[%c0_30, %c0_31, %c0_32], %95 {strides = array<i32>} : memref<1x16x128xbf16, #tpu.memory_space<vmem>>, vector<1x16x128xbf16>,
    return
  }
  func.func @transform_0(%arg0: i32, %arg1: i32) -> (i32, i32, i32) {
    %c0_i32 = arith.constant 0 : i32
    %c0_i32_0 = arith.constant 0 : i32
    return %arg0, %arg1, %c0_i32 : i32, i32, i32
  }
  func.func @transform_1(%arg0: i32, %arg1: i32) -> (i32, i32, i32) {
    %c0_i32 = arith.constant 0 : i32
    %c0_i32_0 = arith.constant 0 : i32
    %c0_i32_1 = arith.constant 0 : i32
    return %arg0, %c0_i32, %c0_i32_0 : i32, i32, i32
  }
  func.func @transform_2(%arg0: i32, %arg1: i32) -> (i32, i32, i32) {
    %c0_i32 = arith.constant 0 : i32
    %c0_i32_0 = arith.constant 0 : i32
    %c0_i32_1 = arith.constant 0 : i32
    return %arg0, %c0_i32, %c0_i32_0 : i32, i32, i32
  }
  func.func @transform_3(%arg0: i32, %arg1: i32) -> (i32, i32, i32) {
    %c0_i32 = arith.constant 0 : i32
    %c0_i32_0 = arith.constant 0 : i32
    return %arg0, %arg1, %c0_i32 : i32, i32, i32
  }
}

</mosaic_0001>

<bundles_post_ra>
// kernel: tpu_custom_call.1
= control target key start
LH: loop header
LB: loop body
LE: loop exit
PB: predicated region body
PF: predicated region fallthrough
CT: control target
= control target key end

     0   :  { %8 = vsyncpa [#allocation3], 0  ;;  %s1154_s0 = inlined_call_operand.vmem [shape: f32[2,16,8], index: 0, kind: input, shape index: {}]   ;;  %s1155_s1 = inlined_call_operand.vmem [shape: f32[2,8,8], index: 1, kind: input, shape index: {}]   ;;  %s1156_s2 = inlined_call_operand.vmem [shape: f32[2,8,128], index: 2, kind: input, shape index: {}]   ;;  %s1157_s3 = inlined_call_operand.hbm [shape: bf16[2,16,128], index: 3, kind: output, shape index: {}]  }
   0x1   :  { %10 = vsyncpa [#allocation3 + $0x1], 0  ;;  %s954_s12 = smov 0   ;;  %s956_s13 = smov 0  }
   0x2   :  { %s958_s14 = smov 0   ;;  %s960_s15 = smov 0  }
   0x3   :  { %s962_s16 = smov 0   ;;  %s964_s17 = smov 0  }
   0x4 LB: > { %s723_s18 = sadd.s32 4294967295, %s928_s17   ;;  %s724_s19 = sadd.s32 4294967294, %s928_s17   ;;  %s928_s17 = sphi %s964_s17, %s16_s17   ;;  %s924_s16 = sphi %s962_s16, %s1164_s16   ;;  %s920_s15 = sphi %s960_s15, %s1163_s15   ;;  %s916_s14 = sphi %s958_s14, %s1162_s14   ;;  %s912_s13 = sphi %s956_s13, %s1161_s13   ;;  %s908_s12 = sphi %s954_s12, %s1160_s12  }
   0x5   : > { %s28_s20 = sadd.s32 1, %s924_s16  ;;  %s117_s21 = sadd.s32 1, %s916_s14 }
   0x6   : > { %p30_p0 = scmp.ge.s32.totalorder %s28_s20, 2  ;;  %p127_p1 = scmp.ne.s32.totalorder %s916_s14, %s912_s13 }
   0x7   : > { %p128_p2 = scmp.eq.s32.totalorder %s723_s18, 1  ;;  %p133_p3 = scmp.ne.s32.totalorder %s912_s13, %s908_s12 }
   0x8   : > { %s1166_s20 = smov (%p30_p0, %s28_s20), 0  ;;  %p134_p5 = scmp.eq.s32.totalorder %s724_s19, 1 }
   0x9   : > { %p994_p4 = por %p128_p2, %p127_p1  ;;  %s112_s23 = ssub.s32 %s924_s16, %s1166_s20 }
   0xa   : > { %p727_p6 = scmp.ge.s32.totalorder %s928_s17, 1  ;;  %p115_p7 = scmp.eq.s32.totalorder %s112_s23, 0 }
   0xb   : > { %p1001_p8 = por %p134_p5, %p133_p3  ;;  %p179_p9 = scmp.lt.s32.totalorder %s928_s17, 3 }
   0xc   : > { %s1007_s25 = scalar_select %p115_p7, %s916_s14, %s117_s21  }
   0xd   : > { %p180_p10 = pnand %p727_p6, %p179_p9 }
   0xe   : > { %p216_p11 = scmp.lt.s32.totalorder (!%p180_p10), %s920_s15, 1  ;;  %vm238_vm0 = vcmask (!%p180_p10), 64512   ;;  %v323_v7 = vlaneseq (!%p180_p10)  ;;  %v930_v36 = vmov (!%p180_p10), 0.0   ;;  %s212_s11 = sand.u32 (!%p180_p10), 1, %s912_s13  }
   0xf   : > { %183 = sbr.rel (%p180_p10) target bundleno = 1814 (0x716), region = 32  ;;  %s728_s18 = sshll.u32 (!%p180_p10), %s212_s11, 3 }
  0x10   : > { %v1029_v8 = vand.u32 (!%p180_p10), 127, %v323_v7  ;;  %s214_s19 = scalar_lea.vmem (!%p180_p10), [#allocation2], %s728_s18  ;;  %s754_s23 = sshll.u32 (!%p180_p10), %s920_s15, 7 }
  0x11   : > { %s620_s21 = sshll.u32 (!%p180_p10), %s214_s19, 4  ;;  %s1108_s29 = scalar_lea.sflag (!%p180_p10), [#allocation3], %s212_s11  ;;  %s1101_s21 = int_to_ptr.vmem [resolvable:$true] %s620_s21 }
  0x12   : > { %s850_s30 = scalar_lea.vmem (!%p180_p10), %s1101_s21, 128 }
  0x13   : > { %p851_p12 = scmp.ne.s32.totalorder (!%p180_p10), %s1101_s21, %s850_s30 }
  0x15   : > { %p852_p13 = pnand (!%p180_p10), %p851_p12, %p994_p4 }
  0x16   : > { %s1011_s26 = scalar_select %p216_p11, %s920_s15, 1 }
  0x17   : > { %p853_p0 = pneg %p852_p13  ;;  %s931_s15 = smov [#allocation2]  }
  0x18   : > { %s731_s27 = sshll.u32 %s1011_s26, 3  ;;  %s751_s28 = sshll.u32 %s1011_s26, 4 }
  0x19   : > { %s228_s4 = scalar_lea.vmem %s1155_s1, %s731_s27  ;;  %s223_s7 = scalar_lea.vmem %s1154_s0, %s751_s28 }
  0x1a   : > { %v236_v0 = vld [vmem:[%s228_s4] sm:$0xff]  ;;  %v235_v2 = vld [vmem:[%s223_s7 + $0x8] sm:$0xff]  ;;  %s232_s10 = scalar_lea.vmem %s1156_s2, %s731_s27  ;;  %s1106_s28 = scalar_lea.hbm %s1157_s3, %s754_s23 }
  0x1b   : > { %v234_v1 = vld [vmem:[%s223_s7] sm:$0xff]  ;;  %766 = vmatprep.subr.msk.mxu0 %vm238_vm0, %v236_v0  ;;  %s854_s4 = sshll.u32 %s931_s15, 4  ;;  %s855_s4 = int_to_ptr.vmem [resolvable:$false] %s854_s4 }
  0x1c   : > { %768 = vmatprep.mubr.msk.f32.mxu0 %vm238_vm0, %v234_v1  ;;  %767 = vmatpush3.xpose.msk.msra.mxu0 %vm238_vm0, %v236_v0  ;;  %s856_s5 = scalar_lea.vmem %s855_s4, 256  ;;  %p857_p1 = scmp.lt.s32.totalorder %s1101_s21, %s855_s4 }
  0x1d   : > { %p858_p2 = scmp.lt.s32.totalorder %s856_s5, %s850_s30 }
  0x1f   : > { %769 = vmatmul.mubr.msk.f32.vlgmr.msra.gmra.mrb[0].mxu0 %vm238_vm0, %v235_v2  ;;  %p859_p3 = por %p858_p2, %p857_p1 }
  0x21   : > { %p860_p5 = pnand %p859_p3, %p853_p0 }
  0xf2   : > { %v770_v3 = vpop.f32.mrb[0].mxu0 }
  0xf3   : > { %v314_v4 = vpop.f32.mrb[1].mxu0  ;;  %v328_v6 = vsel %vm238_vm0, %v770_v3, inf }
  0xf4   : > { %v325_v5 = vsel %vm238_vm0, %v314_v4, inf }
  0xf5   : > { %326 = vmin.xlane.f32.xlu0 %v325_v5 }
  0xf9   : > { %329 = vmin.xlane.f32.xlu0 %v328_v6 }
 0x182   : > { %v1031_v9 = vpop.xlane.xlu0 %326 }
 0x183   : > { %vm331_vm1 = vcmp.eq.f32.partialorder %v314_v4, %v1031_v9  ;;  %v371_v62 = vmax.f32 %v1031_v9, 1e-10 }
 0x184   : > { %v333_v10 = vsel %vm331_vm1, %v1029_v8, 8 }
 0x185   : > { %v335_v11 = vsel %vm238_vm0, %v333_v10, 2147483647  ;;  %834 = vrcp.f32 %v371_v62 }
 0x186   : > { %v1036_v12 = vpop.xlane.xlu0 %329  ;;  %v337_v13 = vshra.s32 %v335_v11, 16  ;;  %v336_v19 = vand.u32 65535, %v335_v11 }
 0x187   : > { %vm332_vm2 = vcmp.eq.f32.partialorder %v770_v3, %v1036_v12  ;;  %v372_v0 = vmax.f32 %v1036_v12, 1e-10 }
 0x188   : > { %v334_v14 = vsel %vm332_vm2, %v1029_v8, 8  ;;  %v339_v15 = vcvt.s32.f32 %v337_v13  ;;  %v338_v21 = vcvt.s32.f32 %v336_v19 }
 0x189   : > { %v350_v16 = vsel %vm238_vm0, %v334_v14, 2147483647 }
 0x18a   : > { %340 = vmin.xlane.f32.xlu1 %v339_v15  ;;  %v352_v17 = vshra.s32 %v350_v16, 16  ;;  %v351_v22 = vand.u32 65535, %v350_v16 }
 0x18c   : > { %v354_v18 = vcvt.s32.f32 %v352_v17  ;;  %v353_v25 = vcvt.s32.f32 %v351_v22 }
 0x18e   : > { %355 = vmin.xlane.f32.xlu1 %v354_v18 }
 0x18f   : > { %v1060_v11 = vpop.eup %834 }
 0x217   : > { %v341_v20 = vpop.xlane.xlu1 %340 }
 0x218   : > { %vm342_vm3 = vcmp.eq.f32.partialorder %v339_v15, %v341_v20  ;;  %v347_v27 = vcvt.f32.s32 %v341_v20 }
 0x219   : > { %v343_v23 = vsel %vm342_vm3, %v338_v21, inf }
 0x21a   : > { %344 = vmin.xlane.f32.xlu0 %v343_v23  ;;  %v348_v29 = vshll.u32 %v347_v27, 16 }
 0x21b   : > { %v356_v24 = vpop.xlane.xlu1 %355 }
 0x21c   : > { %vm357_vm4 = vcmp.eq.f32.partialorder %v354_v18, %v356_v24  ;;  %v362_v30 = vcvt.f32.s32 %v356_v24 }
 0x21d   : > { %v358_v26 = vsel %vm357_vm4, %v353_v25, inf }
 0x21e   : > { %359 = vmin.xlane.f32.xlu1 %v358_v26  ;;  %v363_v34 = vshll.u32 %v362_v30, 16 }
 0x2a7   : > { %v345_v28 = vpop.xlane.xlu0 %344 }
 0x2a8   : > { %v346_v31 = vcvt.f32.s32 %v345_v28 }
 0x2aa   : > { %v349_v32 = vadd.s32 %v348_v29, %v346_v31 }
 0x2ab   : > { %v360_v33 = vpop.xlane.xlu1 %359 }
 0x2ac   : > { %vm365_vm5 = vcmp.eq.s32.totalorder %v1029_v8, %v349_v32  ;;  %v361_v35 = vcvt.f32.s32 %v360_v33 }
 0x2ad   : > { %v736_v37 = vsel %vm365_vm5, 1.0, %v930_v36 }
 0x2ae   : > { %v364_v38 = vadd.s32 %v363_v34, %v361_v35  ;;  %vm383_vm6 = vcmp.gt.f32.partialorder %v736_v37, 0.0  ;;  %v377_v17 = vmul.f32 %v1060_v11, %v736_v37 }
 0x2af   : > { %v385_v39 = vsel %vm383_vm6, 1e+30, %v314_v4 }
 0x2b0   : > { %vm366_vm7 = vcmp.eq.s32.totalorder %v1029_v8, %v364_v38  ;;  %v387_v40 = vsel %vm238_vm0, %v385_v39, inf }
 0x2b1   : > { %388 = vmin.xlane.f32.xlu0 %v387_v40  ;;  %v1046_v41 = vsel %vm366_vm7, 1.0, %v930_v36 }
 0x2b2   : > { %vm384_vm8 = vcmp.gt.f32.partialorder %v1046_v41, 0.0 }
 0x2b3   : > { %v1049_v42 = vsel %vm384_vm8, 1e+30, %v770_v3 }
 0x2b4   : > { %v390_v43 = vsel %vm238_vm0, %v1049_v42, inf }
 0x2b5   : > { %391 = vmin.xlane.f32.xlu1 %v390_v43 }
 0x33e   : > { %v389_v44 = vpop.xlane.xlu0 %388 }
 0x33f   : > { %vm393_vm9 = vcmp.eq.f32.partialorder %v385_v39, %v389_v44  ;;  %v433_v63 = vmax.f32 %v389_v44, 1e-10 }
 0x340   : > { %v395_v45 = vsel %vm393_vm9, %v1029_v8, 8 }
 0x341   : > { %v397_v46 = vsel %vm238_vm0, %v395_v45, 2147483647  ;;  %836 = vrcp.f32 %v433_v63 }
 0x342   : > { %v392_v47 = vpop.xlane.xlu1 %391  ;;  %v399_v48 = vshra.s32 %v397_v46, 16  ;;  %v398_v54 = vand.u32 65535, %v397_v46  ;;  %838 = vrcp.f32 %v372_v0 }
 0x343   : > { %vm394_vm10 = vcmp.eq.f32.partialorder %v1049_v42, %v392_v47  ;;  %v434_v1 = vmax.f32 %v392_v47, 1e-10 }
 0x344   : > { %v396_v49 = vsel %vm394_vm10, %v1029_v8, 8  ;;  %v401_v50 = vcvt.s32.f32 %v399_v48  ;;  %v400_v56 = vcvt.s32.f32 %v398_v54  ;;  %v237_v48 = vld [vmem:[%s232_s10] sm:$0xff] }
 0x345   : > { %v412_v51 = vsel %vm238_vm0, %v396_v49, 2147483647  ;;  %840 = vrcp.f32 %v434_v1  ;;  %771 = vmatprep.subr.mxu1 %v237_v48 }
 0x346   : > { %402 = vmin.xlane.f32.xlu0 %v401_v50  ;;  %v414_v52 = vshra.s32 %v412_v51, 16  ;;  %v413_v57 = vand.u32 65535, %v412_v51  ;;  %772 = vmatpush3.msra.mxu1 %v237_v48 }
 0x348   : > { %v416_v53 = vcvt.s32.f32 %v414_v52  ;;  %v415_v60 = vcvt.s32.f32 %v413_v57 }
 0x34a   : > { %417 = vmin.xlane.f32.xlu1 %v416_v53 }
 0x34b   : > { %v1063_v9 = vpop.eup %836 }
 0x34c   : > { %v1068_v19 = vpop.eup %838 }
 0x34d   : > { %v378_v24 = vmul.f32 %v1068_v19, %v1046_v41 }
 0x34f   : > { %v1072_v22 = vpop.eup %840 }
 0x3d3   : > { %v403_v55 = vpop.xlane.xlu0 %402 }
 0x3d4   : > { %vm404_vm11 = vcmp.eq.f32.partialorder %v401_v50, %v403_v55  ;;  %v409_v2 = vcvt.f32.s32 %v403_v55 }
 0x3d5   : > { %v405_v58 = vsel %vm404_vm11, %v400_v56, inf }
 0x3d6   : > { %406 = vmin.xlane.f32.xlu0 %v405_v58  ;;  %v410_v4 = vshll.u32 %v409_v2, 16 }
 0x3d7   : > { %v418_v59 = vpop.xlane.xlu1 %417 }
 0x3d8   : > { %vm419_vm12 = vcmp.eq.f32.partialorder %v416_v53, %v418_v59  ;;  %v424_v5 = vcvt.f32.s32 %v418_v59 }
 0x3d9   : > { %v420_v61 = vsel %vm419_vm12, %v415_v60, inf }
 0x3da   : > { %421 = vmin.xlane.f32.xlu1 %v420_v61  ;;  %v425_v13 = vshll.u32 %v424_v5, 16  ;;  %v444_v5 = vadd.f32 %v1072_v22, %v1068_v19 }
 0x463   : > { %v407_v3 = vpop.xlane.xlu0 %406 }
 0x464   : > { %v408_v6 = vcvt.f32.s32 %v407_v3 }
 0x466   : > { %v411_v7 = vadd.s32 %v410_v4, %v408_v6  ;;  %v443_v6 = vadd.f32 %v1063_v9, %v1060_v11 }
 0x467   : > { %v422_v10 = vpop.xlane.xlu1 %421 }
 0x468   : > { %v423_v14 = vcvt.f32.s32 %v422_v10  ;;  %vm427_vm13 = vcmp.eq.s32.totalorder %v1029_v8, %v411_v7 }
 0x469   : > { %v738_v12 = vsel %vm427_vm13, 1.0, %v930_v36 }
 0x46a   : > { %v426_v15 = vadd.s32 %v425_v13, %v423_v14  ;;  %vm445_vm14 = vcmp.gt.f32.partialorder %v738_v12, 0.0  ;;  %v439_v16 = vmul.f32 %v1063_v9, %v738_v12 }
 0x46b   : > { %v447_v18 = vsel %vm445_vm14, 1e+30, %v385_v39 }
 0x46c   : > { %v449_v20 = vsel %vm238_vm0, %v447_v18, inf  ;;  %vm428_vm15 = vcmp.eq.s32.totalorder %v1029_v8, %v426_v15  ;;  %v441_v21 = vadd.f32 %v439_v16, %v377_v17 }
 0x46d   : > { %450 = vmin.xlane.f32.xlu0 %v449_v20  ;;  %v739_v23 = vsel %vm428_vm15, 1.0, %v930_v36 }
 0x46e   : > { %vm446_vm1 = vcmp.gt.f32.partialorder %v739_v23, 0.0  ;;  %v440_v25 = vmul.f32 %v1072_v22, %v739_v23 }
 0x46f   : > { %v448_v26 = vsel %vm446_vm1, 1e+30, %v1049_v42 }
 0x470   : > { %v452_v27 = vsel %vm238_vm0, %v448_v26, inf  ;;  %v442_v28 = vadd.f32 %v440_v25, %v378_v24 }
 0x471   : > { %453 = vmin.xlane.f32.xlu1 %v452_v27 }
 0x4fa   : > { %v451_v29 = vpop.xlane.xlu0 %450 }
 0x4fb   : > { %vm455_vm2 = vcmp.eq.f32.partialorder %v447_v18, %v451_v29  ;;  %v495_v49 = vmax.f32 %v451_v29, 1e-10 }
 0x4fc   : > { %v457_v30 = vsel %vm455_vm2, %v1029_v8, 8 }
 0x4fd   : > { %v459_v31 = vsel %vm238_vm0, %v457_v30, 2147483647  ;;  %842 = vrcp.f32 %v495_v49 }
 0x4fe   : > { %v454_v32 = vpop.xlane.xlu1 %453  ;;  %v461_v33 = vshra.s32 %v459_v31, 16  ;;  %v460_v40 = vand.u32 65535, %v459_v31 }
 0x4ff   : > { %vm456_vm3 = vcmp.eq.f32.partialorder %v448_v26, %v454_v32  ;;  %v496_v50 = vmax.f32 %v454_v32, 1e-10 }
 0x500   : > { %v458_v34 = vsel %vm456_vm3, %v1029_v8, 8  ;;  %v463_v35 = vcvt.s32.f32 %v461_v33  ;;  %v462_v42 = vcvt.s32.f32 %v460_v40 }
 0x501   : > { %v474_v37 = vsel %vm238_vm0, %v458_v34, 2147483647  ;;  %844 = vrcp.f32 %v496_v50 }
 0x502   : > { %464 = vmin.xlane.f32.xlu0 %v463_v35  ;;  %v476_v38 = vshra.s32 %v474_v37, 16  ;;  %v475_v43 = vand.u32 65535, %v474_v37 }
 0x504   : > { %v478_v39 = vcvt.s32.f32 %v476_v38  ;;  %v477_v46 = vcvt.s32.f32 %v475_v43 }
 0x506   : > { %479 = vmin.xlane.f32.xlu1 %v478_v39 }
 0x507   : > { %v843_v60 = vpop.eup %842 }
 0x508   : > { %v505_v10 = vadd.f32 %v843_v60, %v443_v6 }
 0x50b   : > { %v845_v1 = vpop.eup %844 }
 0x50c   : > { %v506_v7 = vadd.f32 %v845_v1, %v444_v5 }
 0x50e   : > { %846 = vrcp.f32 %v506_v7 }
 0x50f   : > { %848 = vrcp.f32 %v505_v10 }
 0x58f   : > { %v465_v41 = vpop.xlane.xlu0 %464 }
 0x590   : > { %vm466_vm4 = vcmp.eq.f32.partialorder %v463_v35, %v465_v41  ;;  %v471_v51 = vcvt.f32.s32 %v465_v41 }
 0x591   : > { %v467_v44 = vsel %vm466_vm4, %v462_v42, inf }
 0x592   : > { %468 = vmin.xlane.f32.xlu0 %v467_v44  ;;  %v472_v53 = vshll.u32 %v471_v51, 16 }
 0x593   : > { %v480_v45 = vpop.xlane.xlu1 %479 }
 0x594   : > { %vm481_vm5 = vcmp.eq.f32.partialorder %v478_v39, %v480_v45  ;;  %v486_v54 = vcvt.f32.s32 %v480_v45 }
 0x595   : > { %v482_v47 = vsel %vm481_vm5, %v477_v46, inf }
 0x596   : > { %483 = vmin.xlane.f32.xlu1 %v482_v47  ;;  %v487_v58 = vshll.u32 %v486_v54, 16 }
 0x61f   : > { %v469_v52 = vpop.xlane.xlu0 %468 }
 0x620   : > { %v470_v55 = vcvt.f32.s32 %v469_v52 }
 0x622   : > { %v473_v56 = vadd.s32 %v472_v53, %v470_v55 }
 0x623   : > { %v484_v57 = vpop.xlane.xlu1 %483 }
 0x624   : > { %vm489_vm6 = vcmp.eq.s32.totalorder %v1029_v8, %v473_v56  ;;  %v485_v59 = vcvt.f32.s32 %v484_v57 }
 0x625   : > { %v740_v61 = vsel %vm489_vm6, 1.0, %v930_v36 }
 0x626   : > { %v488_v62 = vadd.s32 %v487_v58, %v485_v59  ;;  %v501_v63 = vmul.f32 %v843_v60, %v740_v61 }
 0x628   : > { %vm490_vm7 = vcmp.eq.s32.totalorder %v1029_v8, %v488_v62  ;;  %v503_v0 = vadd.f32 %v501_v63, %v441_v21  ;;  %v847_v8 = vpop.eup %846 }
 0x629   : > { %v741_v2 = vsel %vm490_vm7, 1.0, %v930_v36  ;;  %v849_v13 = vpop.eup %848 }
 0x62a   : > { %v502_v3 = vmul.f32 %v845_v1, %v741_v2  ;;  %773 = vmatprep.mubr.msk.f32.mxu1 %vm238_vm0, %v503_v0 }
 0x62c   : > { %v504_v4 = vadd.f32 %v502_v3, %v442_v28 }
 0x62e   : > { %774 = vmatmul.mubr.msk.f32.vlgmr.msra.gmra.mrb[0].mxu1 %vm238_vm0, %v504_v4 }
 0x701   : > { %v775_v36 = vpop.f32.mrb[0].mxu1 }
 0x702   : > { %v593_v14 = vmul.f32 %v847_v8, %v775_v36  ;;  %v579_v12 = vpop.f32.mrb[1].mxu1 }
 0x703   : > { %v592_v15 = vmul.f32 %v849_v13, %v579_v12 }
 0x705   : > { %v758_v11 = vpack.c.bf16 %v593_v14, %v592_v15 }
 0x707   : > { %759 = vst [vmem:[%s214_s19] sm:$0xff] %v758_v11  }
 0x708   : > { %863 = shalt.err (!%p860_p5)
}
 0x709   : > { %s864_s6 = scalar_lea.hbm %s1106_s28, 128  ;;  %s868_s9 = scalar_lea.hbm %s1157_s3, 256 }
 0x70a   : > { %p865_p6 = scmp.ne.s32.totalorder %s1106_s28, %s864_s6  ;;  %p869_p10 = scmp.lt.u32.totalorder %s1106_s28, %s1157_s3 }
 0x70b   : > { %p870_p11 = scmp.lt.u32.totalorder %s868_s9, %s864_s6  ;;  %p872_p13 = scmp.lt.u32.totalorder %s864_s6, %s1106_s28 }
 0x70c   : > { %p866_p7 = pnand %p865_p6, %p994_p4 }
 0x70d   : > { %p871_p12 = por %p870_p11, %p869_p10 }
 0x70e   : > { %p867_p9 = pneg %p866_p7 }
 0x70f   : > { %p873_p0 = por %p872_p13, %p871_p12 }
 0x711   : > { %p874_p1 = pnand %p873_p0, %p867_p9 }
 0x713   : > { %877 = shalt.err (!%p874_p1)
}
 0x714   : > { %s932_s18 = smov 64   ;;  %s933_s19 = smov 4  }
 0x715   : > { %776 = dma.vmem_to_hbm [thread:$0]  (%p994_p4), %s1101_s21, 128, %s1106_s28, %s1108_s29, %s932_s18, %s932_s18, %s933_s19  }
 0x716 PF: > { %p782_p2 = scmp.ge.s32.totalorder %s928_s17, 2  ;;  %s635_s23 = sand.u32 1, %s908_s12  }
 0x717   : > { %s636_s26 = scalar_lea.sflag [#allocation3], %s635_s23 }
 0x718   : > { %p779_p3 = pnand %p782_p2, %p1001_p8 }
 0x71a   : > { %903 = dma.done.wait (!%p779_p3), %s636_s26, 128  }
 0x71b   : > { %905 = vsyncadd (!%p779_p3), %s636_s26, 4294967168  ;;  %s16_s17 = sadd.s32 1, %s928_s17   ;;  %s1160_s12 = smov %s912_s13 }
 0x71c   : > { %p13_p5 = scmp.ge.s32.totalorder %s16_s17, 4   ;;  %s1161_s13 = smov %s916_s14 }
 0x71d   : > { %s1162_s14 = smov %s1007_s25  ;;  %s1163_s15 = smov %s924_s16 }
 0x71e   : > { %s1164_s16 = smov %s1166_s20  ;;  %15 = sbr.rel (!%p13_p5) target bundleno = 4 (0x4), region = 73 }
 0x725   :  { %641 = vsyncpa [#allocation3], 1 }
 0x726   :  { %643 = vsyncpa [#allocation3 + $0x1], 1 }

</bundles_post_ra>
